<compile_context>
chip_gen: v7x
topology: tpu7x:2x2x1
jax: 0.10.0
libtpu: 0.0.40
codegen_flags: <defaults>
</compile_context>

<pallas_src>
import math
import numpy as np
import jax
import jax.numpy as jnp
from jax.experimental import pallas as pl
from jax.experimental.pallas import tpu as pltpu


# ---------------------------------------------------------------------------
# Host-side construction of the 1-D linear operators (exact PyTorch semantics).
# ---------------------------------------------------------------------------
def _pool1d(in_size: int, out_size: int) -> np.ndarray:
    """(out_size, in_size) 1-D adaptive average pooling operator (PyTorch bins)."""
    M = np.zeros((out_size, in_size), np.float32)
    for o in range(out_size):
        a = (o * in_size) // out_size
        b = math.ceil((o + 1) * in_size / out_size)
        M[o, a:b] = 1.0 / (b - a)
    return M


def _bilerp1d(in_size: int, out_size: int) -> np.ndarray:
    """(out_size, in_size) 1-D bilinear upsample operator, align_corners=False."""
    M = np.zeros((out_size, in_size), np.float32)
    scale = in_size / out_size
    for o in range(out_size):
        s = max((o + 0.5) * scale - 0.5, 0.0)
        i0 = min(int(math.floor(s)), in_size - 1)
        i1 = min(i0 + 1, in_size - 1)
        frac = s - i0
        M[o, i0] += 1.0 - frac
        M[o, i1] += frac
    return M


# ---------------------------------------------------------------------------
# Wrapper: builds fused operators, tiles HW, calls the Pallas kernel.
# ---------------------------------------------------------------------------
def pyramid_pooling_module(x_nchw, conv_weights, sizes=(1, 2, 3, 6), *,
                           compute_dtype=jnp.bfloat16, hw_tile=128):
    """x_nchw: (N, C, H, W); conv_weights[i]: (C // len(sizes), C). Returns NCHW out."""
    N, C, H, W = x_nchw.shape
    HW = H * W
    nb = len(sizes)
    assert C % nb == 0, "in_channels must be divisible by pyramid depth"
    c_out = C // nb
    nbc = nb * c_out               # concatenated branch channels
    c_total = nbc + C
    out_dtype = x_nchw.dtype

    if HW % hw_tile != 0 or hw_tile % 8 != 0:
        hw_tile = HW               # fall back to a single spatial tile
    n_t = HW // hw_tile

    s2 = [s * s for s in sizes]
    offs = [0]
    for v in s2:
        offs.append(offs[-1] + v)
    sum_s2 = offs[-1]                          # 1 + 4 + 9 + 36 = 50
    s2p = ((sum_s2 + 15) // 16) * 16           # pad rows to a clean sublane tile (64)

    # Fused (stacked) pooling / upsample operators; separable build handles H != W.
    P_all = np.zeros((s2p, HW), np.float32)    # (sum_s2_pad, HW)
    B_all = np.zeros((HW, s2p), np.float32)    # (HW, sum_s2_pad)
    for i, s in enumerate(sizes):
        P_all[offs[i]:offs[i + 1], :] = np.kron(_pool1d(H, s), _pool1d(W, s))
        B_all[:, offs[i]:offs[i + 1]] = np.kron(_bilerp1d(s, H), _bilerp1d(s, W))

    # Block-diagonal mask: pooled rows of branch i only feed output-channel block i.
    mask = np.zeros((s2p, nbc), np.float32)
    for i in range(nb):
        mask[offs[i]:offs[i + 1], i * c_out:(i + 1) * c_out] = 1.0

    # Concatenated 1x1-conv weights: (C, nb*c_out), column block i = conv_weights[i].T
    W_cat = jnp.concatenate([jnp.asarray(w).T for w in conv_weights], axis=1)

    # NCHW -> (N, HW, C), cast operands to the compute dtype (bf16 by default).
    x_flat = jnp.transpose(x_nchw, (0, 2, 3, 1)).reshape(N, HW, C)
    x_c = x_flat.astype(compute_dtype)
    P_c = jnp.asarray(P_all).astype(compute_dtype)
    B_c = jnp.asarray(B_all).astype(compute_dtype)
    W_c = W_cat.astype(compute_dtype)
    mask_j = jnp.asarray(mask)                 # f32, multiplies the f32 conv accumulator

    def kernel(x_ref, p_ref, b_ref, w_ref, m_ref, o_ref, conv_scr):
        t = pl.program_id(1)

        # Stage 1 (once per batch element): fused pooling + 1x1 convs into scratch.
        @pl.when(t == 0)
        def _():
            x = x_ref[0]                                               # (HW, C)
            pooled = jnp.dot(p_ref[...], x,
                             preferred_element_type=jnp.float32)       # (s2p, C)
            conv = jnp.dot(pooled.astype(w_ref.dtype), w_ref[...],
                           preferred_element_type=jnp.float32)         # (s2p, nbc)
            conv_scr[...] = (conv * m_ref[...]).astype(conv_scr.dtype)

        # Stage 2 (per HW tile): fused bilinear upsample of all branches + passthrough,
        # stored directly into lane-dense slices of the output block (no concat).
        up = jnp.dot(b_ref[...], conv_scr[...],
                     preferred_element_type=jnp.float32)                # (hw_tile, nbc)
        o_ref[0, :, 0:nbc] = up.astype(o_ref.dtype)
        row0 = pl.multiple_of(t * hw_tile, hw_tile)
        o_ref[0, :, nbc:c_total] = x_ref[0, pl.ds(row0, hw_tile), :].astype(o_ref.dtype)

    itemsize = lambda a: jnp.dtype(a.dtype).itemsize
    flops = 2 * N * (s2p * HW * C + s2p * C * nbc + HW * s2p * nbc)
    bytes_accessed = int(
        N * HW * C * itemsize(x_c) + N * HW * c_total * jnp.dtype(out_dtype).itemsize
        + P_c.size * itemsize(P_c) + B_c.size * itemsize(B_c)
        + W_c.size * itemsize(W_c) + mask_j.size * itemsize(mask_j))

    out_flat = pl.pallas_call(
        kernel,
        out_shape=jax.ShapeDtypeStruct((N, HW, c_total), out_dtype),
        grid_spec=pltpu.PrefetchScalarGridSpec(
            num_scalar_prefetch=0,
            grid=(N, n_t),
            in_specs=[
                pl.BlockSpec((1, HW, C), lambda n, t: (n, 0, 0)),   # x (full spatial)
                pl.BlockSpec((s2p, HW), lambda n, t: (0, 0)),       # fused pool matrix
                pl.BlockSpec((hw_tile, s2p), lambda n, t: (t, 0)),  # fused upsample tile
                pl.BlockSpec((C, nbc), lambda n, t: (0, 0)),        # concatenated weights
                pl.BlockSpec((s2p, nbc), lambda n, t: (0, 0)),      # block-diagonal mask
            ],
            out_specs=pl.BlockSpec((1, hw_tile, c_total), lambda n, t: (n, t, 0)),
            scratch_shapes=[pltpu.VMEM((s2p, nbc), compute_dtype)],
        ),
        compiler_params=pltpu.CompilerParams(
            dimension_semantics=("parallel", "arbitrary"),
            vmem_limit_bytes=64 * 1024 * 1024,
        ),
        cost_estimate=pl.CostEstimate(flops=flops, transcendentals=0,
                                      bytes_accessed=bytes_accessed),
    )(x_c, P_c, B_c, W_c, mask_j)

    out = out_flat.reshape(N, H, W, c_total).transpose(0, 3, 1, 2)
    return out, (x_c, P_c, B_c, W_c, mask_j)


def _reference(x_c, P_all, B_all, W_cat, mask, out_dtype):
    """Pure-JAX reference using the same fused operators and cast points."""
    pooled = jnp.einsum("ph,nhc->npc", P_all, x_c, preferred_element_type=jnp.float32)
    conv = jnp.einsum("npc,co->npo", pooled.astype(W_cat.dtype), W_cat,
                      preferred_element_type=jnp.float32)
    conv = (conv * mask[None]).astype(W_cat.dtype)
    up = jnp.einsum("hp,npo->nho", B_all, conv, preferred_element_type=jnp.float32)
    return jnp.concatenate([up, x_c.astype(jnp.float32)], axis=-1).astype(out_dtype)


if __name__ == "__main__":
    # Small but lane-dense demo config (rectangular spatial to exercise H != W path).
    N, C, H, W = 2, 128, 16, 24
    sizes = (1, 2, 3, 6)
    c_out = C // len(sizes)

    key = jax.random.PRNGKey(0)
    kx, *kw = jax.random.split(key, 1 + len(sizes))
    x = jax.random.normal(kx, (N, C, H, W), jnp.float32)
    # Conv2d(C, C/4, kernel_size=1, bias=False) weights per branch: (c_out, C).
    conv_weights = [0.1 * jax.random.normal(k, (c_out, C), jnp.float32) for k in kw]

    out, (x_c, P_c, B_c, W_c, mask_j) = pyramid_pooling_module(x, conv_weights, sizes)
    out = jax.block_until_ready(out)
    assert out.shape == (N, C + len(sizes) * c_out, H, W), out.shape

    # 1) Kernel vs. pure-JAX fused-operator reference (same bf16 operands / f32 accum).
    ref_flat = _reference(x_c, P_c, B_c, W_c, mask_j, out.dtype)
    ref = ref_flat.reshape(N, H, W, -1).transpose(0, 3, 1, 2)
    np.testing.assert_allclose(np.asarray(out), np.asarray(ref), rtol=5e-3, atol=5e-3)

    # 2) Semantic spot check: branch 0 is global-avg-pool -> 1x1 conv -> broadcast.
    mean_x = np.asarray(x).mean(axis=(2, 3))                       # (N, C)
    y0 = mean_x @ np.asarray(conv_weights[0]).T                    # (N, c_out)
    got0 = np.asarray(out)[:, :c_out, :, :]
    np.testing.assert_allclose(got0, np.broadcast_to(y0[:, :, None, None], got0.shape),
                               rtol=0, atol=3e-2)

    # 3) Passthrough channels equal the input (up to bf16 operand rounding).
    np.testing.assert_allclose(np.asarray(out)[:, -C:], np.asarray(x),
                               rtol=1e-2, atol=1e-2)

    print("KERNEL_OK")
</pallas_src>

<mosaic_0001>
module attributes {stable_mosaic.version = 11 : i64} {
  func.func @kernel(%arg0: i32, %arg1: i32, %arg2: memref<1x384x128xbf16, #tpu.memory_space<vmem>>, %arg3: memref<64x384xbf16, #tpu.memory_space<vmem>>, %arg4: memref<128x64xbf16, #tpu.memory_space<vmem>>, %arg5: memref<128x128xbf16, #tpu.memory_space<vmem>>, %arg6: memref<64x128xf32, #tpu.memory_space<vmem>>, %arg7: memref<1x128x256xf32, #tpu.memory_space<vmem>>, %arg8: memref<64x128xbf16, #tpu.memory_space<vmem>>) attributes {dimension_semantics = [#tpu.dimension_semantics<parallel>, #tpu.dimension_semantics<arbitrary>], iteration_bounds = array<i64: 2, 3>, scalar_prefetch = 0 : i64, scratch_operands = 1 : i64, tpu.core_type = #tpu.core_type<tc>, window_params = [{transform_indices = @transform_0, window_bounds = array<i64: 1, 384, 128>}, {pipeline_mode = #tpu.pipeline_mode<synchronous>, transform_indices = @transform_1, window_bounds = array<i64: 64, 384>}, {transform_indices = @transform_2, window_bounds = array<i64: 128, 64>}, {pipeline_mode = #tpu.pipeline_mode<synchronous>, transform_indices = @transform_3, window_bounds = array<i64: 128, 128>}, {pipeline_mode = #tpu.pipeline_mode<synchronous>, transform_indices = @transform_4, window_bounds = array<i64: 64, 128>}, {transform_indices = @transform_5, window_bounds = array<i64: 1, 128, 256>}]} {
    %c0_i32 = arith.constant 0 : i32
    %0 = arith.cmpi eq, %arg1, %c0_i32 : i32
    %1 = arith.extui %0 : i1 to i32
    %c0_i32_0 = arith.constant 0 : i32
    %2 = arith.cmpi ne, %1, %c0_i32_0 : i32
    scf.if %2 {
      %c0_11 = arith.constant 0 : index
      %c0_12 = arith.constant 0 : index
      %c0_13 = arith.constant 0 : index
      %18 = vector.load %arg2[%c0_11, %c0_12, %c0_13] : memref<1x384x128xbf16, #tpu.memory_space<vmem>>, vector<1x384x128xbf16>
      %19 = vector.shape_cast %18 : vector<1x384x128xbf16> to vector<384x128xbf16>
      %c0_14 = arith.constant 0 : index
      %c0_15 = arith.constant 0 : index
      %20 = vector.load %arg3[%c0_14, %c0_15] : memref<64x384xbf16, #tpu.memory_space<vmem>>, vector<64x384xbf16>
      %cst_16 = arith.constant dense<0.000000e+00> : vector<64x128xf32>
      %21 = tpu.matmul %20, %19, %cst_16 {dimension_numbers = #tpu.dot_dimension_numbers<[1], [0], [0], [1], [0, 0, 1, 1], [], []>} : vector<64x384xbf16>, vector<384x128xbf16>, vector<64x128xf32> -> vector<64x128xf32>
      %22 = arith.truncf %21 : vector<64x128xf32> to vector<64x128xbf16>
      %c0_17 = arith.constant 0 : index
      %c0_18 = arith.constant 0 : index
      %23 = vector.load %arg5[%c0_17, %c0_18] : memref<128x128xbf16, #tpu.memory_space<vmem>>, vector<128x128xbf16>
      %cst_19 = arith.constant dense<0.000000e+00> : vector<64x128xf32>
      %24 = tpu.matmul %22, %23, %cst_19 {dimension_numbers = #tpu.dot_dimension_numbers<[1], [0], [0], [1], [0, 0, 1, 1], [], []>} : vector<64x128xbf16>, vector<128x128xbf16>, vector<64x128xf32> -> vector<64x128xf32>
      %c0_20 = arith.constant 0 : index
      %c0_21 = arith.constant 0 : index
      %25 = vector.load %arg6[%c0_20, %c0_21] : memref<64x128xf32, #tpu.memory_space<vmem>>, vector<64x128xf32>
      %26 = arith.mulf %24, %25 : vector<64x128xf32>
      %27 = arith.truncf %26 : vector<64x128xf32> to vector<64x128xbf16>
      %c0_22 = arith.constant 0 : index
      %c0_23 = arith.constant 0 : index
      %28 = vector.load %arg8[%c0_22, %c0_23] : memref<64x128xbf16, #tpu.memory_space<vmem>>, vector<64x128xbf16>
      tpu.vector_store %arg8[%c0_22, %c0_23], %27 {strides = array<i32>} : memref<64x128xbf16, #tpu.memory_space<vmem>>, vector<64x128xbf16>,
    } else {
    }
    %c0 = arith.constant 0 : index
    %c0_1 = arith.constant 0 : index
    %3 = vector.load %arg4[%c0, %c0_1] : memref<128x64xbf16, #tpu.memory_space<vmem>>, vector<128x64xbf16>
    %c0_2 = arith.constant 0 : index
    %c0_3 = arith.constant 0 : index
    %4 = vector.load %arg8[%c0_2, %c0_3] : memref<64x128xbf16, #tpu.memory_space<vmem>>, vector<64x128xbf16>
    %cst = arith.constant dense<0.000000e+00> : vector<128x128xf32>
    %5 = tpu.matmul %3, %4, %cst {dimension_numbers = #tpu.dot_dimension_numbers<[1], [0], [0], [1], [0, 0, 1, 1], [], []>} : vector<128x64xbf16>, vector<64x128xbf16>, vector<128x128xf32> -> vector<128x128xf32>
    %c0_4 = arith.constant 0 : index
    %c0_5 = arith.constant 0 : index
    %c0_6 = arith.constant 0 : index
    %6 = vector.load %arg7[%c0_4, %c0_5, %c0_6] : memref<1x128x256xf32, #tpu.memory_space<vmem>>, vector<1x128x128xf32>
    %7 = vector.shape_cast %6 : vector<1x128x128xf32> to vector<128x128xf32>
    %8 = vector.shape_cast %5 : vector<128x128xf32> to vector<1x128x128xf32>
    tpu.vector_store %arg7[%c0_4, %c0_5, %c0_6], %8 {strides = array<i32>} : memref<1x128x256xf32, #tpu.memory_space<vmem>>, vector<1x128x128xf32>,
    %c128_i32 = arith.constant 128 : i32
    %9 = arith.muli %arg1, %c128_i32 : i32
    %10 = tpu.assume_multiple %9, 128 : i32
    %c0_7 = arith.constant 0 : index
    %11 = arith.index_cast %10 : i32 to index
    %c0_8 = arith.constant 0 : index
    %12 = vector.load %arg2[%c0_7, %11, %c0_8] : memref<1x384x128xbf16, #tpu.memory_space<vmem>>, vector<1x128x128xbf16>
    %13 = vector.shape_cast %12 : vector<1x128x128xbf16> to vector<128x128xbf16>
    %14 = arith.extf %13 : vector<128x128xbf16> to vector<128x128xf32>
    %c0_9 = arith.constant 0 : index
    %c0_10 = arith.constant 0 : index
    %c128 = arith.constant 128 : index
    %15 = vector.load %arg7[%c0_9, %c0_10, %c128] : memref<1x128x256xf32, #tpu.memory_space<vmem>>, vector<1x128x128xf32>
    %16 = vector.shape_cast %15 : vector<1x128x128xf32> to vector<128x128xf32>
    %17 = vector.shape_cast %14 : vector<128x128xf32> to vector<1x128x128xf32>
    tpu.vector_store %arg7[%c0_9, %c0_10, %c128], %17 {strides = array<i32>} : memref<1x128x256xf32, #tpu.memory_space<vmem>>, vector<1x128x128xf32>,
    return
  }
  func.func @transform_0(%arg0: i32, %arg1: i32) -> (i32, i32, i32) {
    %c0_i32 = arith.constant 0 : i32
    %c0_i32_0 = arith.constant 0 : i32
    %c0_i32_1 = arith.constant 0 : i32
    return %arg0, %c0_i32, %c0_i32_0 : i32, i32, i32
  }
  func.func @transform_1(%arg0: i32, %arg1: i32) -> (i32, i32) {
    %c0_i32 = arith.constant 0 : i32
    %c0_i32_0 = arith.constant 0 : i32
    %c0_i32_1 = arith.constant 0 : i32
    return %c0_i32, %c0_i32_0 : i32, i32
  }
  func.func @transform_2(%arg0: i32, %arg1: i32) -> (i32, i32) {
    %c0_i32 = arith.constant 0 : i32
    %c0_i32_0 = arith.constant 0 : i32
    return %arg1, %c0_i32 : i32, i32
  }
  func.func @transform_3(%arg0: i32, %arg1: i32) -> (i32, i32) {
    %c0_i32 = arith.constant 0 : i32
    %c0_i32_0 = arith.constant 0 : i32
    %c0_i32_1 = arith.constant 0 : i32
    return %c0_i32, %c0_i32_0 : i32, i32
  }
  func.func @transform_4(%arg0: i32, %arg1: i32) -> (i32, i32) {
    %c0_i32 = arith.constant 0 : i32
    %c0_i32_0 = arith.constant 0 : i32
    %c0_i32_1 = arith.constant 0 : i32
    return %c0_i32, %c0_i32_0 : i32, i32
  }
  func.func @transform_5(%arg0: i32, %arg1: i32) -> (i32, i32, i32) {
    %c0_i32 = arith.constant 0 : i32
    %c0_i32_0 = arith.constant 0 : i32
    return %arg0, %arg1, %c0_i32 : i32, i32, i32
  }
}

</mosaic_0001>

<bundles_post_ra>
// kernel: tpu_custom_call.1
= control target key start
LH: loop header
LB: loop body
LE: loop exit
PB: predicated region body
PF: predicated region fallthrough
CT: control target
= control target key end

     0   :  { %s2697_s0 = inlined_call_operand.hbm [shape: bf16[2,384,128], index: 0, kind: input, shape index: {}]   ;;  %s2698_s1 = inlined_call_operand.hbm [shape: bf16[64,384], index: 1, kind: input, shape index: {}]   ;;  %s2699_s2 = inlined_call_operand.hbm [shape: bf16[384,64], index: 2, kind: input, shape index: {}]   ;;  %s2700_s3 = inlined_call_operand.hbm [shape: bf16[128,128], index: 3, kind: input, shape index: {}]   ;;  %s2701_s4 = inlined_call_operand.hbm [shape: f32[64,128], index: 4, kind: input, shape index: {}]   ;;  %s2702_s5 = inlined_call_operand.hbm [shape: f32[2,384,256], index: 5, kind: output, shape index: {}]  }
   0x1   :  { %2726 = sst [smem:[#allocation27_spill]] %s2697_s0 }
   0x2   :  { %2727 = sst [smem:[#allocation28_spill]] %s2698_s1 }
   0x3   :  { %2728 = sst [smem:[#allocation29_spill]] %s2700_s3 }
   0x4   :  { %2729 = sst [smem:[#allocation30_spill]] %s2702_s5 }
   0x5   :  { %10 = vsyncpa [#allocation4], 0 }
   0x6   :  { %12 = vsyncpa [#allocation4 + $0x1], 0 }
   0x7   :  { %13 = vsyncpa [#allocation7], 0 }
   0x8   :  { %14 = vsyncpa [#allocation11], 0 }
   0x9   :  { %15 = vsyncpa [#allocation5], 0 }
   0xa   :  { %17 = vsyncpa [#allocation5 + $0x1], 0  ;;  %s2191_s18 = smov 0   ;;  %s2193_s19 = smov 0  }
   0xb   :  { %s2195_s20 = smov 0   ;;  %s2197_s21 = smov 0  }
   0xc   :  { %s2199_s22 = smov 0   ;;  %s2201_s23 = smov 0  }
   0xd   :  { %s2203_s24 = smov 0   ;;  %s2205_s25 = smov 0  }
   0xe   :  { %s2207_s26 = smov 0   ;;  %s2209_s27 = smov 0  }
   0xf   :  { %s2211_s28 = smov 0   ;;  %s2213_s29 = smov 0  }
  0x10   :  { %s2215_s30 = smov 0   ;;  %s2217_s6 = smov 0  }
  0x11 LB: > { %2730 = sst [smem:[#allocation19_spill]] %s2093_s18  ;;  %s2258_s7 = sadd.s32 4294967295, %s2145_s6   ;;  %s2145_s6 = sphi %s2217_s6, %s23_s6   ;;  %s2141_s30 = sphi %s2215_s30, %s2795_s30   ;;  %s2137_s29 = sphi %s2213_s29, %s2794_s29   ;;  %s2133_s28 = sphi %s2211_s28, %s2793_s28   ;;  %s2129_s27 = sphi %s2209_s27, %s2792_s27   ;;  %s2125_s26 = sphi %s2207_s26, %s2791_s26   ;;  %s2121_s25 = sphi %s2205_s25, %s2790_s25   ;;  %s2117_s24 = sphi %s2203_s24, %s2789_s24   ;;  %s2113_s23 = sphi %s2201_s23, %s2788_s23   ;;  %s2109_s22 = sphi %s2199_s22, %s2787_s22   ;;  %s2105_s21 = sphi %s2197_s21, %s2786_s21   ;;  %s2101_s20 = sphi %s2195_s20, %s2785_s20   ;;  %s2097_s19 = sphi %s2193_s19, %s2784_s19   ;;  %s2093_s18 = sphi %s2191_s18, %s2781_s18  }
  0x12   : > { %2731 = sst [smem:[#allocation20_spill]] %s2097_s19  ;;  %s1311_s8 = sadd.s32 4294967294, %s2145_s6  }
  0x13   : > { %2732 = sst [smem:[#allocation21_spill]] %s2129_s27  ;;  %p55_p0 = scmp.ne.s32.totalorder %s2121_s25, %s2117_s24 }
  0x14   : > { %2733 = sst [smem:[#allocation22_spill]] %s2133_s28  ;;  %p2707_p1 = scmp.eq.s32.totalorder %s2258_s7, 0 }
  0x15   : > { %p102_p2 = scmp.ne.s32.totalorder %s2109_s22, %s2105_s21  ;;  %p169_p3 = scmp.ne.s32.totalorder %s2101_s20, %s2097_s19 }
  0x16   : > { %p2268_p4 = por %p2707_p1, %p55_p0  ;;  %p170_p5 = scmp.eq.s32.totalorder %s2258_s7, 5 }
  0x17   : > { %p2275_p6 = por %p102_p2, %p2707_p1  ;;  %p175_p7 = scmp.ne.s32.totalorder %s2097_s19, %s2093_s18 }
  0x18   : > { %s2734_s9 = scalar_select %p2268_p4, 1, 0 }
  0x19   : > { %s2736_s10 = scalar_select %p2275_p6, 1, 0 }
  0x1a   : > { %2735 = sst [smem:[#allocation23_spill]] %s2734_s9  ;;  %p2281_p8 = por %p170_p5, %p169_p3 }
  0x1b   : > { %2737 = sst [smem:[#allocation24_spill]] %s2736_s10  ;;  %p176_p9 = scmp.eq.s32.totalorder %s1311_s8, 5 }
  0x1c   : > { %s2738_s11 = scalar_select %p2281_p8, 1, 0 }
  0x1d   : > { %p1312_p10 = scmp.ge.s32.totalorder %s2145_s6, 1  ;;  %p183_p11 = scmp.lt.s32.totalorder %s2145_s6, 7 }
  0x1e   : > { %2739 = sst [smem:[#allocation25_spill]] %s2738_s11  ;;  %p2287_p12 = por %p176_p9, %p175_p7 }
  0x1f   : > { %p2291_p13 = pnand %p1312_p10, %p183_p11  ;;  %s2147_s14 = smov [#allocation6]  }
  0x20   : > { %s2740_s12 = scalar_select %p2287_p12, 1, 0 }
  0x21   : > { %s2742_s13 = scalar_select %p2291_p13, 1, 0 }
  0x22   : > { %2741 = sst [smem:[#allocation26_spill]] %s2740_s12  ;;  %s195_s15 = sshll.u32 %s2147_s14, 4  ;;  %s196_s15 = int_to_ptr.vmem [resolvable:$true] %s195_s15 }
  0x23   : > { %p1631_p0 = pneg %p2291_p13  ;;  %s2744_s1 = sld [smem:[#allocation28_spill]] }
  0x25   : > { %p2299_p2 = pnand %p1631_p0, %p2707_p1 }
  0x27   : > { %s2743_s16 = scalar_select %p2299_p2, 1, 0 }
  0x28   : > { %p2311_p5 = pneg %p2299_p2 }
  0x29   : > { %s1839_s24 = scalar_lea.hbm %s2744_s1, 1536 }
  0x2a   : > { %p1840_p3 = scmp.ne.s32.totalorder %s2744_s1, %s1839_s24  ;;  %p1846_p10 = scmp.lt.u32.totalorder %s1839_s24, %s2744_s1 }
  0x2c   : > { %p1842_p7 = pnand %p2311_p5, %p1840_p3 }
  0x2e   : > { %p1843_p9 = pneg %p1842_p7 }
  0x30   : > { %p1848_p11 = pnand %p1846_p10, %p1843_p9 }
  0x32   : > { %1851 = shalt.err (!%p1848_p11)
}
  0x33   : > { %s1852_s17 = scalar_lea.vmem %s196_s15, 1536  ;;  %p1860_p8 = scmp.lt.s32.totalorder %s196_s15, %s196_s15 }
  0x34   : > { %p1853_p0 = scmp.ne.s32.totalorder %s196_s15, %s1852_s17  ;;  %p1861_p6 = scmp.lt.s32.totalorder %s1852_s17, %s1852_s17 }
  0x36   : > { %p1855_p1 = pnand %p1853_p0, %p2311_p5  ;;  %p1862_p4 = por %p1861_p6, %p1860_p8 }
  0x38   : > { %p1856_p12 = pneg %p1855_p1 }
  0x3a   : > { %p1863_p13 = pnand %p1862_p4, %p1856_p12 }
  0x3c   : > { %1866 = shalt.err (!%p1863_p13)
}
  0x3d   : > { %s2148_s12 = smov 192   ;;  %s2149_s18 = smov 12  }
  0x3e   : > { %1634 = dma.hbm_to_vmem [thread:$0]  (!%p2299_p2), %s2744_s1, 1536, %s196_s15, [#allocation7], %s2148_s12, %s2148_s12, %s2149_s18  }
  0x3f   : > { %p49_p1 = scmp.ne.s32.totalorder %s2125_s26, %s2121_s25  ;;  %p2721_p4 = scmp.eq.s32.totalorder %s2145_s6, 0 }
  0x40   : > { %p2720_p8 = scmp.lt.s32.totalorder %s2145_s6, 6  ;;  %s235_s17 = sand.u32 1, %s2145_s6  }
  0x41   : > { %p51_p6 = por %p2721_p4, %p49_p1  ;;  %s237_s5 = sand.u32 1, %s2125_s26  }
  0x42   : > { %s1609_s28 = smul.u32 192, %s237_s5  ;;  %s2747_s0 = sld [smem:[#allocation27_spill]] }
  0x43   : > { %s1610_s27 = smul.u32 3072, %s2141_s30  ;;  %p2340_p12 = pnand %p2720_p8, %p51_p6 }
  0x44   : > { %s239_s12 = scalar_lea.vmem [#allocation3], %s1609_s28  ;;  %s2351_s5 = scalar_lea.sflag [#allocation4], %s235_s17 }
  0x45   : > { %s246_s18 = sshll.u32 %s239_s12, 4  ;;  %p1869_p3 = pneg %p2340_p12  ;;  %s2349_s18 = int_to_ptr.vmem [resolvable:$true] %s246_s18 }
  0x48   : > { %s2347_s15 = scalar_lea.hbm %s2747_s0, %s1610_s27  ;;  %s1872_s10 = scalar_lea.hbm %s2747_s0, 6144 }
  0x49   : > { %s1867_s11 = scalar_lea.hbm %s2347_s15, 3072  ;;  %p1873_p10 = scmp.lt.u32.totalorder %s2347_s15, %s2747_s0 }
  0x4a   : > { %p1868_p13 = scmp.ne.s32.totalorder %s2347_s15, %s1867_s11  ;;  %p1874_p11 = scmp.lt.u32.totalorder %s1872_s10, %s1867_s11 }
  0x4b   : > { %p1876_p1 = scmp.lt.u32.totalorder %s1867_s11, %s2347_s15 }
  0x4c   : > { %p1870_p7 = pnand %p1869_p3, %p1868_p13  ;;  %p1875_p0 = por %p1874_p11, %p1873_p10 }
  0x4e   : > { %p1871_p9 = pneg %p1870_p7  ;;  %p1877_p6 = por %p1876_p1, %p1875_p0 }
  0x50   : > { %p1878_p8 = pnand %p1877_p6, %p1871_p9 }
  0x52   : > { %1881 = shalt.err (!%p1878_p8)
}
  0x53   : > { %s1882_s28 = scalar_lea.vmem %s2349_s18, 3072  ;;  %s2150_s17 = smov [#allocation3]  }
  0x54   : > { %p1883_p13 = scmp.ne.s32.totalorder %s2349_s18, %s1882_s28  ;;  %s1887_s12 = sshll.u32 %s2150_s17, 4  ;;  %s1888_s12 = int_to_ptr.vmem [resolvable:$false] %s1887_s12 }
  0x55   : > { %s1889_s8 = scalar_lea.vmem %s1888_s12, 6144  ;;  %p1890_p2 = scmp.lt.s32.totalorder %s2349_s18, %s1888_s12 }
  0x56   : > { %p1885_p7 = pnand %p1883_p13, %p1869_p3  ;;  %p1891_p10 = scmp.lt.s32.totalorder %s1889_s8, %s1882_s28 }
  0x58   : > { %p1886_p4 = pneg %p1885_p7  ;;  %p1892_p11 = por %p1891_p10, %p1890_p2 }
  0x5a   : > { %p1893_p0 = pnand %p1892_p11, %p1886_p4 }
  0x5c   : > { %1896 = shalt.err (!%p1893_p0)
}
  0x5d   : > { %s2724_s11 = smov 64   ;;  %s2725_s27 = smov 4  }
  0x5e   : > { %1644 = dma.hbm_to_vmem [thread:$0]  (!%p2340_p12), %s2347_s15, 3072, %s2349_s18, %s2351_s5, %s2724_s11, %s2724_s11, %s2725_s27  }
  0x5f   : > { %s2153_s9 = smov [#allocation9]   ;;  %s2154_s21 = smov [#allocation10]  }
  0x60   : > { %s208_s10 = sshll.u32 %s2153_s9, 4  ;;  %s221_s28 = sshll.u32 %s2154_s21, 4  ;;  %s209_s10 = int_to_ptr.vmem [resolvable:$true] %s208_s10  ;;  %s222_s28 = int_to_ptr.vmem [resolvable:$true] %s221_s28 }
  0x61   : > { %s2748_s3 = sld [smem:[#allocation29_spill]] }
  0x67   : > { %s1897_s8 = scalar_lea.hbm %s2748_s3, 1024 }
  0x68   : > { %p1898_p2 = scmp.ne.s32.totalorder %s2748_s3, %s1897_s8  ;;  %p1904_p12 = scmp.lt.u32.totalorder %s1897_s8, %s2748_s3 }
  0x6a   : > { %p1900_p4 = pnand %p1898_p2, %p2311_p5 }
  0x6c   : > { %p1901_p8 = pneg %p1900_p4 }
  0x6e   : > { %p1906_p3 = pnand %p1904_p12, %p1901_p8 }
  0x70   : > { %1909 = shalt.err (!%p1906_p3)
}
  0x71   : > { %s1910_s15 = scalar_lea.vmem %s209_s10, 1024  ;;  %p1918_p13 = scmp.lt.s32.totalorder %s209_s10, %s209_s10 }
  0x72   : > { %p1911_p9 = scmp.ne.s32.totalorder %s209_s10, %s1910_s15  ;;  %p1919_p7 = scmp.lt.s32.totalorder %s1910_s15, %s1910_s15 }
  0x74   : > { %p1913_p1 = pnand %p1911_p9, %p2311_p5  ;;  %p1920_p10 = por %p1919_p7, %p1918_p13 }
  0x76   : > { %p1914_p6 = pneg %p1913_p1 }
  0x78   : > { %p1921_p11 = pnand %p1920_p10, %p1914_p6 }
  0x7a   : > { %1924 = shalt.err (!%p1921_p11)
}
  0x7b   : > { %p2749_p0 = scmp.ne.s32.totalorder %s2743_s16, 0  ;;  %s1925_s9 = scalar_lea.hbm %s2701_s4, 1024 }
  0x7c   : > { %p1926_p2 = scmp.ne.s32.totalorder %s2701_s4, %s1925_s9  ;;  %p1932_p12 = scmp.lt.u32.totalorder %s1925_s9, %s2701_s4 }
  0x7d   : > { %1637 = dma.hbm_to_vmem [thread:$0]  (!%p2749_p0), %s2748_s3, 1024, %s209_s10, [#allocation7], %s2724_s11, %s2724_s11, %s2725_s27  }
  0x7e   : > { %p1928_p4 = pnand %p1926_p2, %p2311_p5 }
  0x80   : > { %p1929_p8 = pneg %p1928_p4 }
  0x82   : > { %p1934_p3 = pnand %p1932_p12, %p1929_p8 }
  0x84   : > { %1937 = shalt.err (!%p1934_p3)
}
  0x85   : > { %s1938_s19 = scalar_lea.vmem %s222_s28, 1024  ;;  %p1946_p13 = scmp.lt.s32.totalorder %s222_s28, %s222_s28 }
  0x86   : > { %p1939_p9 = scmp.ne.s32.totalorder %s222_s28, %s1938_s19  ;;  %p1947_p7 = scmp.lt.s32.totalorder %s1938_s19, %s1938_s19 }
  0x88   : > { %p1941_p1 = pnand %p1939_p9, %p2311_p5  ;;  %p1948_p10 = por %p1947_p7, %p1946_p13 }
  0x8a   : > { %p1942_p6 = pneg %p1941_p1 }
  0x8c   : > { %p1949_p11 = pnand %p1948_p10, %p1942_p6 }
  0x8e   : > { %1952 = shalt.err (!%p1949_p11)
}
  0x8f   : > { %s2155_s10 = smov 128   ;;  %s2156_s14 = smov 8  }
  0x90   : > { %1640 = dma.hbm_to_vmem [thread:$0]  (!%p2749_p0), %s2701_s4, 1024, %s222_s28, [#allocation11], %s2155_s10, %s2155_s10, %s2156_s14  }
  0x91   : > { %s89_s1 = sadd.s32 1, %s2113_s23  ;;  %s32_s24 = sadd.s32 1, %s2137_s29 }
  0x92   : > { %p96_p5 = scmp.ne.s32.totalorder %s2113_s23, %s2109_s22  ;;  %p33_p2 = scmp.ge.s32.totalorder %s32_s24, 3 }
  0x93   : > { %s159_s18 = sadd.s32 1, %s2101_s20  ;;  %p2750_p4 = scmp.eq.s32.totalorder %s2145_s6, 0 }
  0x94   : > { %s258_s21 = sand.u32 1, %s2113_s23   ;;  %s2797_s24 = smov (%p33_p2, %s32_s24), 0 }
  0x95   : > { %p2428_p8 = por %p96_p5, %p2750_p4  ;;  %s2752_s16 = sadd.s32 1, %s2141_s30 }
  0x96   : > { %s2799_s16 = smov (!%p33_p2, %s2752_s16), %s2141_s30  ;;  %s86_s28 = ssub.s32 %s2137_s29, %s2797_s24 }
  0x97   : > { %s1318_s17 = sshll.u32 %s258_s21, 6  ;;  %p37_p0 = scmp.ge.s32.totalorder %s2799_s16, 2 }
  0x98   : > { %p87_p12 = scmp.eq.s32.totalorder %s86_s28, 0  ;;  %s1396_s12 = sshll.u32 %s2137_s29, 10 }
  0x99   : > { %s2801_s16 = smov (%p37_p0, %s2799_s16), 0  ;;  %s2451_s15 = scalar_lea.hbm %s2699_s2, %s1396_s12 }
  0x9a   : > { %s2444_s8 = scalar_select %p87_p12, %s2113_s23, %s89_s1  }
  0x9b   : > { %s39_s19 = ssub.s32 %s2141_s30, %s2801_s16  ;;  %s260_s21 = scalar_lea.vmem [#allocation8], %s1318_s17 }
  0x9c   : > { %p40_p3 = scmp.eq.s32.totalorder %s39_s19, 0  ;;  %s156_s0 = sor.u32 %s86_s28, %s39_s19 }
  0x9d   : > { %p157_p9 = scmp.eq.s32.totalorder %s156_s0, 0  ;;  %s267_s11 = sshll.u32 %s260_s21, 4  ;;  %s2461_s11 = int_to_ptr.vmem [resolvable:$true] %s267_s11 }
  0x9e   : > { %s2753_s27 = sadd.s32 1, %s2125_s26  ;;  %p2754_p1 = scmp.lt.s32.totalorder %s2145_s6, 6 }
  0x9f   : > { %s2456_s3 = scalar_select %p40_p3, %s2125_s26, %s2753_s27  }
  0xa0   : > { %s2459_s1 = scalar_select %p157_p9, %s2101_s20, %s159_s18  }
  0xa1   : > { %p2467_p6 = pnand %p2754_p1, %p2428_p8  ;;  %s1953_s28 = scalar_lea.hbm %s2451_s15, 1024 }
  0xa2   : > { %p1954_p13 = scmp.ne.s32.totalorder %s2451_s15, %s1953_s28  ;;  %s1958_s17 = scalar_lea.hbm %s2699_s2, 3072 }
  0xa3   : > { %p1955_p7 = pneg %p2467_p6  ;;  %p1959_p5 = scmp.lt.u32.totalorder %s2451_s15, %s2699_s2 }
  0xa4   : > { %p1960_p2 = scmp.lt.u32.totalorder %s1958_s17, %s1953_s28  ;;  %p1962_p8 = scmp.lt.u32.totalorder %s1953_s28, %s2451_s15 }
  0xa5   : > { %p1956_p10 = pnand %p1955_p7, %p1954_p13 }
  0xa6   : > { %p1961_p4 = por %p1960_p2, %p1959_p5 }
  0xa7   : > { %p1957_p11 = pneg %p1956_p10 }
  0xa8   : > { %p1963_p0 = por %p1962_p8, %p1961_p4 }
  0xaa   : > { %p1964_p12 = pnand %p1963_p0, %p1957_p11 }
  0xac   : > { %1967 = shalt.err (!%p1964_p12)
}
  0xad   : > { %s1968_s10 = scalar_lea.vmem %s2461_s11, 1024  ;;  %s2157_s14 = smov [#allocation8]  }
  0xae   : > { %p1969_p3 = scmp.ne.s32.totalorder %s2461_s11, %s1968_s10  ;;  %s1973_s0 = sshll.u32 %s2157_s14, 4  ;;  %s1974_s0 = int_to_ptr.vmem [resolvable:$false] %s1973_s0 }
  0xaf   : > { %s1975_s21 = scalar_lea.vmem %s1974_s0, 2048  ;;  %p1976_p13 = scmp.lt.s32.totalorder %s2461_s11, %s1974_s0 }
  0xb0   : > { %p1971_p9 = pnand %p1969_p3, %p1955_p7  ;;  %p1977_p10 = scmp.lt.s32.totalorder %s1975_s21, %s1968_s10 }
  0xb2   : > { %p1972_p1 = pneg %p1971_p9  ;;  %p1978_p5 = por %p1977_p10, %p1976_p13 }
  0xb4   : > { %p1979_p2 = pnand %p1978_p5, %p1972_p1 }
  0xb6   : > { %1982 = shalt.err (!%p1979_p2)
}
  0xb7   : > { %s2756_s28 = smov 4   ;;  %s2757_s27 = smov 64  }
  0xb8   : > { %1647 = dma.hbm_to_vmem [thread:$0]  (!%p2467_p6), %s2451_s15, 1024, %s2461_s11, %s2351_s5, %s2757_s27, %s2757_s27, %s2756_s28  }
  0xb9   : > { %p2758_p7 = scmp.ne.s32.totalorder %s2742_s13, 0 }
  0xba   : > { %s2759_s18 = sld [smem:[#allocation23_spill]] (!%p2758_p7)  ;;  %s281_s17 = sand.u32 (!%p2758_p7), 1, %s2258_s7  }
  0xbb   : > { %279 = sbr.rel (%p2758_p7) target bundleno = 973 (0x3cd), region = 40  ;;  %s283_s9 = sand.u32 (!%p2758_p7), 1, %s2121_s25  }
  0xbc   : > { %s1611_s19 = smul.u32 (!%p2758_p7), 192, %s283_s9  ;;  %s282_s10 = scalar_lea.sflag (!%p2758_p7), [#allocation4], %s281_s17 }
  0xbe   : > { %s2504_s14 = scalar_lea.vmem (!%p2758_p7), [#allocation3], %s1611_s19 }
  0xc0   : > { %p2760_p11 = scmp.ne.s32.totalorder (!%p2758_p7), %s2759_s18, 0 }
  0xc2   : > { %2068 = dma.done.wait (%p2760_p11), %s282_s10, 3072  }
  0xc3   : > { %2070 = vsyncadd (%p2760_p11), %s282_s10, 4294964224  ;;  %p2761_p4 = scmp.eq.s32.totalorder %s2258_s7, 0 }
  0xc5   : > { %2072 = dma.done.wait (%p2761_p4), [#allocation7], 1536   ;;  %p2762_p6 = pmov %p2761_p4 }
  0xc6   : > { %s2763_s13 = sld [smem:[#allocation24_spill]]  ;;  %s296_s5 = sand.u32 1, %s2109_s22  }
  0xc7   : > { %2074 = vsyncadd (%p2762_p6), [#allocation7], 4294965760  ;;  %s1323_s11 = sshll.u32 %s296_s5, 6 }
  0xc8   : > { %s2515_s15 = scalar_lea.vmem [#allocation8], %s1323_s11 }
  0xcc   : > { %p2764_p8 = scmp.ne.s32.totalorder %s2763_s13, 0 }
  0xce   : > { %2076 = dma.done.wait (%p2764_p8), %s282_s10, 1024  }
  0xcf   : > { %2078 = vsyncadd (%p2764_p8), %s282_s10, 4294966272  ;;  %p2765_p0 = pmov %p2761_p4 }
  0xd1   : > { %2080 = dma.done.wait (%p2765_p0), [#allocation7], 1024   ;;  %p2766_p12 = pmov %p2765_p0 }
  0xd2   : > { %p2767_p3 = pmov %p2765_p0 }
  0xd3   : > { %2082 = vsyncadd (%p2766_p12), [#allocation7], 4294966272 }
  0xd4   : > { %2084 = dma.done.wait (%p2767_p3), [#allocation11], 1024   ;;  %p2768_p9 = pmov %p2765_p0 }
  0xd5   : > { %s2769_s12 = sld [smem:[#allocation20_spill]]  ;;  %s2770_s27 = sld [smem:[#allocation21_spill]] }
  0xd6   : > { %2086 = vsyncadd (%p2768_p9), [#allocation11], 4294966272 }
  0xdb   : > { %s335_s0 = sand.u32 1, %s2769_s12   ;;  %p1327_p1 = scmp.ne.s32.totalorder %s2770_s27, 0 }
  0xdc   : > { %s1326_s21 = sshll.u32 %s335_s0, 8  ;;  %v1783_v0 = vld [vmem:[%s2504_s14 + $0x40] sm:$0xff] (!%p1327_p1)   ;;  %v1786_v3 = vld [vmem:[%s2504_s14 + $0x48] sm:$0xff] (!%p1327_p1)   ;;  %v1789_v6 = vld [vmem:[%s2504_s14 + $0x50] sm:$0xff] (!%p1327_p1)  }
  0xdd   : > { %s2532_s28 = scalar_lea.vmem [#allocation12], %s1326_s21  ;;  %344 = sbr.rel (%p1327_p1) target bundleno = 718 (0x2ce), region = 64  ;;  %v1784_v1 = vld [vmem:[%s2504_s14] sm:$0xff] (!%p1327_p1)   ;;  %1437 = vmatprep.subr.bf16.mxu0 (!%p1327_p1), %v1783_v0  ;;  %v1787_v4 = vld [vmem:[%s2504_s14 + $0x8] sm:$0xff] (!%p1327_p1)   ;;  %v1790_v7 = vld [vmem:[%s2504_s14 + $0x10] sm:$0xff] (!%p1327_p1)  }
  0xde   : > { %v1785_v2 = vld [vmem:[%s2504_s14 + $0x80] sm:$0xff] (!%p1327_p1)   ;;  %1438 = vmatpush3.bf16.msra.mxu0 (!%p1327_p1), %v1784_v1  ;;  %v1788_v5 = vld [vmem:[%s2504_s14 + $0x88] sm:$0xff] (!%p1327_p1)   ;;  %v1791_v8 = vld [vmem:[%s2504_s14 + $0x90] sm:$0xff] (!%p1327_p1)  }
  0xdf   : > { %1513 = vmatprep.subr.bf16.mxu1 (!%p1327_p1), %v1785_v2  ;;  %1439 = vmatprep.subr.bf16.mxu0 (!%p1327_p1), %v1786_v3  ;;  %v1792_v9 = vld [vmem:[%s2504_s14 + $0x58] sm:$0xff] (!%p1327_p1)   ;;  %v1795_v12 = vld [vmem:[%s2504_s14 + $0x60] sm:$0xff] (!%p1327_p1)   ;;  %v1798_v15 = vld [vmem:[%s2504_s14 + $0x68] sm:$0xff] (!%p1327_p1)  }
  0xe0   : > { %1514 = vmatpush3.bf16.msra.mxu1 (!%p1327_p1), %v1785_v2  ;;  %v1793_v10 = vld [vmem:[%s2504_s14 + $0x18] sm:$0xff] (!%p1327_p1)   ;;  %v1797_v13 = vld [vmem:[%s2504_s14 + $0xa0] sm:$0xff] (!%p1327_p1)   ;;  %v1800_v16 = vld [vmem:[%s2504_s14 + $0xa8] sm:$0xff] (!%p1327_p1)  }
  0xe1   : > { %1515 = vmatprep.subr.bf16.mxu1 (!%p1327_p1), %v1788_v5  ;;  %v1794_v11 = vld [vmem:[%s2504_s14 + $0x98] sm:$0xff] (!%p1327_p1)   ;;  %v1796_v14 = vld [vmem:[%s2504_s14 + $0x20] sm:$0xff] (!%p1327_p1)   ;;  %v1799_v17 = vld [vmem:[%s2504_s14 + $0x28] sm:$0xff] (!%p1327_p1)  }
  0xe2   : > { %1440 = vmatpush3.bf16.msra.mxu0 (!%p1327_p1), %v1787_v4  ;;  %v1801_v18 = vld [vmem:[%s2504_s14 + $0x70] sm:$0xff] (!%p1327_p1)   ;;  %v1804_v21 = vld [vmem:[%s2504_s14 + $0x78] sm:$0xff] (!%p1327_p1)   ;;  %v1807_v26 = vld [vmem:[#allocation6] ss:$12 sps:$4 sm:$0xff] (!%p1327_p1)  }
  0xe3   : > { %1441 = vmatprep.subr.bf16.mxu0 (!%p1327_p1), %v1789_v6  ;;  %v1802_v19 = vld [vmem:[%s2504_s14 + $0x30] sm:$0xff] (!%p1327_p1)   ;;  %v1806_v22 = vld [vmem:[%s2504_s14 + $0xb8] sm:$0xff] (!%p1327_p1)   ;;  %v1811_v28 = vld [vmem:[#allocation6 + $0x20] ss:$12 sps:$4 sm:$0xff] (!%p1327_p1)  }
  0xe4   : > { %1516 = vmatpush3.bf16.msra.mxu1 %v1788_v5  ;;  %v1803_v20 = vld [vmem:[%s2504_s14 + $0xb0] sm:$0xff]   ;;  %v1805_v25 = vld [vmem:[%s2504_s14 + $0x38] sm:$0xff]   ;;  %v1823_v30 = vld [vmem:[#allocation9] sm:$0xff]  }
  0xe5   : > { %1517 = vmatprep.subr.bf16.mxu1 %v1791_v8  ;;  %v1809_v23 = vld [vmem:[#allocation6 + $0x4] ss:$12 sps:$4 sm:$0xff]   ;;  %v1810_v24 = vld [vmem:[#allocation6 + $0x8] ss:$12 sps:$4 sm:$0xff]   ;;  %v1826_v36 = vld [vmem:[#allocation9 + $0x18] sm:$0xff]  }
  0xe6   : > { %1442 = vmatpush3.bf16.msra.mxu0 %v1790_v7  ;;  %649 = vmatprep.mubr.bf16.mxu0 %v1809_v23  ;;  %v1812_v27 = vld [vmem:[#allocation6 + $0x1c] ss:$12 sps:$4 sm:$0xff]   ;;  %v1818_v29 = vld [vmem:[#allocation6 + $0x38] ss:$12 sps:$4 sm:$0xff]   ;;  %v1815_v33 = vld [vmem:[#allocation6 + $0x34] ss:$12 sps:$4 sm:$0xff]  }
  0xe7   : > { %1443 = vmatprep.subr.bf16.mxu0 %v1792_v9  ;;  %1529 = vmatprep.mubr.bf16.mxu1 %v1810_v24  ;;  %v1824_v31 = vld [vmem:[#allocation9 + $0x8] sm:$0xff]   ;;  %v1814_v32 = vld [vmem:[#allocation6 + $0x18] ss:$12 sps:$4 sm:$0xff]   ;;  %v1825_v34 = vld [vmem:[#allocation9 + $0x10] sm:$0xff]  }
  0xe8   : > { %1518 = vmatpush3.bf16.msra.mxu1 %v1791_v8  ;;  %v1819_v35 = vld [vmem:[#allocation6 + $0x50] ss:$12 sps:$4 sm:$0xff]   ;;  %v1820_v38 = vld [vmem:[#allocation6 + $0x4c] ss:$12 sps:$4 sm:$0xff]   ;;  %v1822_v39 = vld [vmem:[#allocation6 + $0x48] ss:$12 sps:$4 sm:$0xff]  }
  0xe9   : > { %1519 = vmatprep.subr.bf16.mxu1 %v1794_v11  ;;  %v1817_v37 = vld [vmem:[#allocation6 + $0x30] ss:$12 sps:$4 sm:$0xff]   ;;  %v1827_v40 = vld [vmem:[#allocation9 + $0x20] sm:$0xff]   ;;  %v1828_v41 = vld [vmem:[#allocation9 + $0x28] sm:$0xff]  }
  0xea   : > { %1444 = vmatpush3.bf16.msra.mxu0 %v1793_v10  ;;  %v1829_v42 = vld [vmem:[#allocation9 + $0x30] sm:$0xff]   ;;  %v1830_v43 = vld [vmem:[#allocation9 + $0x38] sm:$0xff]  }
  0xeb   : > { %1445 = vmatprep.subr.bf16.mxu0 %v1795_v12 }
  0xec   : > { %1520 = vmatpush3.bf16.msra.mxu1 %v1794_v11 }
  0xed   : > { %1521 = vmatprep.subr.bf16.mxu1 %v1797_v13 }
  0xee   : > { %1446 = vmatpush3.bf16.msra.mxu0 %v1796_v14 }
  0xef   : > { %1447 = vmatprep.subr.bf16.mxu0 %v1798_v15 }
  0xf0   : > { %1522 = vmatpush3.bf16.msra.mxu1 %v1797_v13 }
  0xf1   : > { %1523 = vmatprep.subr.bf16.mxu1 %v1800_v16 }
  0xf2   : > { %1448 = vmatpush3.bf16.msra.mxu0 %v1799_v17 }
  0xf3   : > { %1449 = vmatprep.subr.bf16.mxu0 %v1801_v18 }
  0xf4   : > { %1524 = vmatpush3.bf16.msra.mxu1 %v1800_v16 }
  0xf5   : > { %1525 = vmatprep.subr.bf16.mxu1 %v1803_v20 }
  0xf6   : > { %1450 = vmatpush3.bf16.msra.mxu0 %v1802_v19 }
  0xf7   : > { %1451 = vmatprep.subr.bf16.mxu0 %v1804_v21 }
  0xf8   : > { %1526 = vmatpush3.bf16.msra.mxu1 %v1803_v20 }
  0xf9   : > { %1527 = vmatprep.subr.bf16.mxu1 %v1806_v22 }
  0xfa   : > { %1452 = vmatpush3.bf16.msra.mxu0 %v1805_v25  ;;  %v882_v25 = vld [vmem:[#allocation10 + $0x10] sm:$0xff] }
  0xfb   : > { %1537 = vmatprep.subr.bf16.mxu0 %v1823_v30 }
  0xfc   : > { %1528 = vmatpush3.bf16.msra.mxu1 %v1806_v22 }
  0xfd   : > { %650 = vmatmul.mubr.bf16.vlgmr.msra.gmra.mrb[0].mxu0 %v1807_v26  ;;  %1585 = vmatprep.subr.bf16.mxu1 %v1823_v30  ;;  %v883_v26 = vld [vmem:[#allocation10 + $0x18] sm:$0xff] }
  0xfe   : > { %657 = vmatprep.mubr.bf16.mxu0 %v1812_v27  ;;  %1538 = vmatpush3.bf16.msra.mxu0 %v1823_v30 }
  0xff   : > { %1530 = vmatmul.mubr.bf16.vlgmr.msra.gmra.mrb[0].mxu1 %v1811_v28  ;;  %1539 = vmatprep.subr.bf16.mxu0 %v1824_v31  ;;  %v880_v28 = vld [vmem:[#allocation10] sm:$0xff] }
 0x100   : > { %1533 = vmatprep.mubr.bf16.mxu1 %v1818_v29  ;;  %1593 = vmatpush3.bf16.msra.mxu1 %v1823_v30  ;;  %v881_v29 = vld [vmem:[#allocation10 + $0x8] sm:$0xff] }
 0x101   : > { %1586 = vmatprep.subr.bf16.mxu1 %v1824_v31 }
 0x102   : > { %1540 = vmatpush3.bf16.msra.mxu0 %v1824_v31 }
 0x103   : > { %1541 = vmatprep.subr.bf16.mxu0 %v1825_v34 }
 0x104   : > { %1594 = vmatpush3.bf16.msra.mxu1 %v1824_v31 }
 0x105   : > { %658 = vmatmul.mubr.bf16.gmra.mrb[4].mxu0 %v1814_v32  ;;  %1587 = vmatprep.subr.bf16.mxu1 %v1825_v34 }
 0x106   : > { %665 = vmatprep.mubr.bf16.mxu0 %v1815_v33  ;;  %1542 = vmatpush3.bf16.msra.mxu0 %v1825_v34 }
 0x107   : > { %1534 = vmatmul.mubr.bf16.gmra.mrb[4].mxu1 %v1819_v35  ;;  %1543 = vmatprep.subr.bf16.mxu0 %v1826_v36 }
 0x108   : > { %1595 = vmatpush3.bf16.msra.mxu1 %v1825_v34 }
 0x109   : > { %1588 = vmatprep.subr.bf16.mxu1 %v1826_v36 }
 0x10a   : > { %1544 = vmatpush3.bf16.msra.mxu0 %v1826_v36 }
 0x10b   : > { %1545 = vmatprep.subr.bf16.mxu0 %v1827_v40 }
 0x10c   : > { %1596 = vmatpush3.bf16.msra.mxu1 %v1826_v36 }
 0x10d   : > { %666 = vmatmul.mubr.bf16.gmra.mrb[8].mxu0 %v1817_v37  ;;  %1589 = vmatprep.subr.bf16.mxu1 %v1827_v40 }
 0x10e   : > { %673 = vmatprep.mubr.bf16.mxu0 %v1820_v38  ;;  %1546 = vmatpush3.bf16.msra.mxu0 %v1827_v40 }
 0x10f   : > { %1547 = vmatprep.subr.bf16.mxu0 %v1828_v41 }
 0x110   : > { %1597 = vmatpush3.bf16.msra.mxu1 %v1827_v40  ;;  %v887_v40 = vld [vmem:[#allocation10 + $0x38] sm:$0xff] }
 0x111   : > { %1590 = vmatprep.subr.bf16.mxu1 %v1828_v41 }
 0x112   : > { %1548 = vmatpush3.bf16.msra.mxu0 %v1828_v41 }
 0x113   : > { %1549 = vmatprep.subr.bf16.mxu0 %v1829_v42 }
 0x114   : > { %1598 = vmatpush3.bf16.msra.mxu1 %v1828_v41 }
 0x115   : > { %674 = vmatmul.mubr.bf16.gmra.mrb[12].mxu0 %v1822_v39  ;;  %1591 = vmatprep.subr.bf16.mxu1 %v1829_v42  ;;  %v886_v39 = vld [vmem:[#allocation10 + $0x30] sm:$0xff] }
 0x116   : > { %1550 = vmatpush3.bf16.msra.mxu0 %v1829_v42 }
 0x117   : > { %1551 = vmatprep.subr.bf16.mxu0 %v1830_v43 }
 0x118   : > { %1599 = vmatpush3.bf16.msra.mxu1 %v1829_v42  ;;  %v884_v42 = vld [vmem:[#allocation10 + $0x20] sm:$0xff] }
 0x119   : > { %1592 = vmatprep.subr.bf16.mxu1 %v1830_v43 }
 0x11a   : > { %1552 = vmatpush3.bf16.msra.mxu0 %v1830_v43 }
 0x11c   : > { %1600 = vmatpush3.bf16.msra.mxu1 %v1830_v43  ;;  %v885_v43 = vld [vmem:[#allocation10 + $0x28] sm:$0xff] }
 0x1d0   : > { %v1453_v44 = vpop.f32.mrb[0].mxu0 }
 0x1d1   : > { %v1454_v45 = vpop.f32.mrb[1].mxu0 }
 0x1d2   : > { %v1455_v46 = vadd.f32 %v1454_v45, %v1453_v44  ;;  %v1456_v47 = vpop.f32.mrb[2].mxu0  ;;  %v1531_v48 = vpop.f32.mrb[0].mxu1 }
 0x1d3   : > { %v1457_v49 = vpop.f32.mrb[3].mxu0  ;;  %v716_v50 = vpop.f32.mrb[1].mxu1 }
 0x1d4   : > { %v1458_v51 = vadd.f32 %v1457_v49, %v1456_v47  ;;  %v717_v52 = vadd.f32 %v1455_v46, %v716_v50  ;;  %v1532_v53 = vpop.f32.mrb[2].mxu1 }
 0x1d5   : > { %v719_v54 = vpop.f32.mrb[3].mxu1 }
 0x1d6   : > { %v720_v55 = vadd.f32 %v1458_v51, %v719_v54 }
 0x1d8   : > { %v747_v56 = vpack.c.bf16 %v720_v55, %v717_v52  ;;  %v1459_v57 = vpop.f32.mrb[4].mxu0 }
 0x1d9   : > { %v1460_v58 = vpop.f32.mrb[5].mxu0 }
 0x1da   : > { %v1461_v59 = vadd.f32 %v1460_v58, %v1459_v57  ;;  %v1462_v60 = vpop.f32.mrb[6].mxu0  ;;  %1553 = vmatprep.mubr.bf16.mxu0 %v747_v56  ;;  %v1535_v61 = vpop.f32.mrb[4].mxu1 }
 0x1db   : > { %v1463_v62 = vpop.f32.mrb[7].mxu0  ;;  %v732_v63 = vpop.f32.mrb[5].mxu1 }
 0x1dc   : > { %v725_v0 = vadd.f32 %v1531_v48, %v1461_v59  ;;  %v1464_v1 = vadd.f32 %v1463_v62, %v1462_v60  ;;  %v1536_v2 = vpop.f32.mrb[6].mxu1 }
 0x1dd   : > { %v735_v3 = vpop.f32.mrb[7].mxu1 }
 0x1de   : > { %v728_v4 = vadd.f32 %v1532_v53, %v1464_v1 }
 0x1e0   : > { %v748_v5 = vpack.c.bf16 %v728_v4, %v725_v0  ;;  %v1465_v6 = vpop.f32.mrb[8].mxu0 }
 0x1e1   : > { %v1466_v7 = vpop.f32.mrb[9].mxu0 }
 0x1e2   : > { %v1467_v8 = vadd.f32 %v1466_v7, %v1465_v6  ;;  %v1468_v9 = vpop.f32.mrb[10].mxu0  ;;  %1554 = vmatmul.mubr.bf16.vlgmr.msra.gmra.mrb[16].mxu0 %v748_v5 }
 0x1e3   : > { %v1469_v10 = vpop.f32.mrb[11].mxu0 }
 0x1e4   : > { %v1470_v11 = vadd.f32 %v1469_v10, %v1468_v9  ;;  %v733_v12 = vadd.f32 %v1467_v8, %v732_v63 }
 0x1e6   : > { %v736_v13 = vadd.f32 %v1470_v11, %v735_v3 }
 0x1e8   : > { %v749_v14 = vpack.c.bf16 %v736_v13, %v733_v12  ;;  %v1471_v15 = vpop.f32.mrb[12].mxu0 }
 0x1e9   : > { %v1472_v16 = vpop.f32.mrb[13].mxu0 }
 0x1ea   : > { %v1473_v17 = vadd.f32 %v1472_v16, %v1471_v15  ;;  %v1474_v18 = vpop.f32.mrb[14].mxu0  ;;  %1557 = vmatprep.mubr.bf16.mxu1 %v749_v14 }
 0x1eb   : > { %v1475_v19 = vpop.f32.mrb[15].mxu0 }
 0x1ec   : > { %v741_v20 = vadd.f32 %v1535_v61, %v1473_v17  ;;  %v1476_v21 = vadd.f32 %v1475_v19, %v1474_v18 }
 0x1ee   : > { %v744_v22 = vadd.f32 %v1536_v2, %v1476_v21 }
 0x1f0   : > { %v750_v23 = vpack.c.bf16 %v744_v22, %v741_v20 }
 0x1f2   : > { %1558 = vmatmul.mubr.bf16.vlgmr.msra.gmra.mrb[8].mxu1 %v750_v23 }
 0x2b5   : > { %v1555_v24 = vpop.f32.mrb[16].mxu0 }
 0x2b6   : > { %v849_v27 = vpop.f32.mrb[17].mxu0  ;;  %v890_v31 = vmul.f32 %v1555_v24, %v882_v25 }
 0x2b7   : > { %v1556_v30 = vpop.f32.mrb[18].mxu0  ;;  %v888_v34 = vmul.f32 %v880_v28, %v849_v27 }
 0x2b8   : > { %v891_v32 = vmul.f32 %v1556_v30, %v883_v26  ;;  %v852_v33 = vpop.f32.mrb[19].mxu0 }
 0x2b9   : > { %v889_v35 = vmul.f32 %v881_v29, %v852_v33 }
 0x2ba   : > { %v897_v36 = vpack.c.bf16 %v891_v32, %v890_v31 }
 0x2bb   : > { %v896_v37 = vpack.c.bf16 %v889_v35, %v888_v34 }
 0x2bc   : > { %901 = vst [vmem:[#allocation2 + $0x8] sm:$0xff] %v897_v36 }
 0x2bd   : > { %900 = vst [vmem:[#allocation2] sm:$0xff] %v896_v37 }
 0x2c5   : > { %v1559_v38 = vpop.f32.mrb[8].mxu1 }
 0x2c6   : > { %v865_v41 = vpop.f32.mrb[9].mxu1  ;;  %v894_v45 = vmul.f32 %v1559_v38, %v886_v39 }
 0x2c7   : > { %v1560_v44 = vpop.f32.mrb[10].mxu1  ;;  %v892_v48 = vmul.f32 %v884_v42, %v865_v41 }
 0x2c8   : > { %v895_v46 = vmul.f32 %v1560_v44, %v887_v40  ;;  %v868_v47 = vpop.f32.mrb[11].mxu1 }
 0x2c9   : > { %v893_v49 = vmul.f32 %v885_v43, %v868_v47 }
 0x2ca   : > { %v899_v50 = vpack.c.bf16 %v895_v46, %v894_v45 }
 0x2cb   : > { %v898_v51 = vpack.c.bf16 %v893_v49, %v892_v48 }
 0x2cc   : > { %903 = vst [vmem:[#allocation2 + $0x18] sm:$0xff] %v899_v50 }
 0x2cd   : > { %902 = vst [vmem:[#allocation2 + $0x10] sm:$0xff] %v898_v51 }
 0x2ce PF: > { %v920_v52 = vld [vmem:[#allocation2] sm:$0xff]  ;;  %v921_v53 = vld [vmem:[#allocation2 + $0x8] sm:$0xff]  ;;  %vm964_vm0 = vcmask 523264   ;;  %s2771_s7 = sld [smem:[#allocation21_spill]]  ;;  %v1835_v60 = vld [vmem:[%s2515_s15 + $0x10] sm:$0xff]   ;;  %s2772_s10 = sld [smem:[#allocation22_spill]] }
 0x2cf   : > { %1561 = vmatprep.subr.bf16.mxu0 %v920_v52  ;;  %1601 = vmatprep.subr.bf16.mxu1 %v920_v52  ;;  %v1831_v54 = vld [vmem:[%s2515_s15] sm:$0xff]   ;;  %v1833_v58 = vld [vmem:[%s2515_s15 + $0x8] sm:$0xff]   ;;  %v1836_v61 = vld [vmem:[%s2515_s15 + $0x30] sm:$0xff]  }
 0x2d0   : > { %1562 = vmatpush3.bf16.msra.mxu0 %v920_v52  ;;  %1605 = vmatpush3.bf16.msra.mxu1 %v920_v52  ;;  %v1832_v55 = vld [vmem:[%s2515_s15 + $0x20] sm:$0xff]   ;;  %v1834_v59 = vld [vmem:[%s2515_s15 + $0x28] sm:$0xff]   ;;  %v1837_v62 = vld [vmem:[%s2515_s15 + $0x18] sm:$0xff]  }
 0x2d1   : > { %1563 = vmatprep.subr.bf16.mxu0 %v921_v53  ;;  %1602 = vmatprep.subr.bf16.mxu1 %v921_v53  ;;  %v1838_v63 = vld [vmem:[%s2515_s15 + $0x38] sm:$0xff]   ;;  %s1172_s15 = sshll.u32 %s2532_s28, 4  ;;  %s2611_s15 = int_to_ptr.vmem [resolvable:$true] %s1172_s15 }
 0x2d2   : > { %1569 = vmatprep.mubr.msk.bf16.mxu0 %vm964_vm0, %v1831_v54  ;;  %1577 = vmatprep.mubr.msk.bf16.mxu1 %vm964_vm0, %v1832_v55 }
 0x2d3   : > { %v923_v57 = vld [vmem:[#allocation2 + $0x18] sm:$0xff] }
 0x2d4   : > { %v922_v56 = vld [vmem:[#allocation2 + $0x10] sm:$0xff]  ;;  %1564 = vmatpush3.bf16.msra.mxu0 %v921_v53  ;;  %1606 = vmatpush3.bf16.msra.mxu1 %v921_v53  ;;  %s1388_s18 = sshll.u32 %s2771_s7, 7  ;;  %s1397_s13 = sshll.u32 %s2771_s7, 5 }
 0x2d5   : > { %1565 = vmatprep.subr.bf16.mxu0 %v922_v56  ;;  %1603 = vmatprep.subr.bf16.mxu1 %v922_v56  ;;  %s1103_s17 = sshra.s32 %s1388_s18, 3  ;;  %s2774_s7 = sld [smem:[#allocation30_spill]] }
 0x2d6   : > { %s1389_s9 = sshll.u32 %s1103_s17, 2  ;;  %s2775_s18 = sld [smem:[#allocation25_spill]] }
 0x2d7   : > { %s1106_s19 = scalar_lea.vmem %s2504_s14, %s1389_s9 [#allocation3]  ;;  %s1612_s14 = smul.u32 96, %s2772_s10 }
 0x2d8   : > { %1566 = vmatpush3.bf16.msra.mxu0 %v922_v56  ;;  %1607 = vmatpush3.bf16.msra.mxu1 %v922_v56  ;;  %v1399_v0 = vld [vmem:[%s1106_s19] sm:$0xff]   ;;  %v1430_v1 = vld [vmem:[%s1106_s19 + $0x8] sm:$0xff]   ;;  %v1431_v2 = vld [vmem:[%s1106_s19 + $0x10] sm:$0xff]   ;;  %s2621_s9 = scalar_lea.sflag [#allocation5], %s335_s0  ;;  %s2158_s10 = smov [#allocation12]  }
 0x2d9   : > { %1567 = vmatprep.subr.bf16.mxu0 %v923_v57  ;;  %1604 = vmatprep.subr.bf16.mxu1 %v923_v57  ;;  %v1400_v3 = vunpack.c.l.bf16 %v1399_v0  ;;  %v1401_v4 = vunpack.c.h.bf16 %v1399_v0  ;;  %v1404_v5 = vunpack.c.l.bf16 %v1430_v1  ;;  %v1405_v6 = vunpack.c.h.bf16 %v1430_v1  ;;  %v1432_v7 = vld [vmem:[%s1106_s19 + $0x18] sm:$0xff]   ;;  %v1433_v8 = vld [vmem:[%s1106_s19 + $0x20] sm:$0xff]   ;;  %v1434_v9 = vld [vmem:[%s1106_s19 + $0x28] sm:$0xff]   ;;  %s1169_s5 = sadd.s32 %s1612_s14, %s1397_s13  ;;  %s1987_s14 = sshll.u32 %s2158_s10, 4  ;;  %s1988_s14 = int_to_ptr.vmem [resolvable:$false] %s1987_s14 }
 0x2da   : > { %v1408_v10 = vunpack.c.l.bf16 %v1431_v2  ;;  %v1409_v11 = vunpack.c.h.bf16 %v1431_v2  ;;  %v1412_v12 = vunpack.c.l.bf16 %v1432_v7  ;;  %v1413_v13 = vunpack.c.h.bf16 %v1432_v7  ;;  %v1435_v14 = vld [vmem:[%s1106_s19 + $0x30] sm:$0xff]   ;;  %v1436_v15 = vld [vmem:[%s1106_s19 + $0x38] sm:$0xff]   ;;  %s1393_s11 = sshll.u32 %s1169_s5, 7  ;;  %s1983_s19 = scalar_lea.vmem %s2611_s15, 4096 }
 0x2db   : > { %v1416_v16 = vunpack.c.l.bf16 %v1433_v8  ;;  %v1417_v17 = vunpack.c.h.bf16 %v1433_v8  ;;  %v1420_v18 = vunpack.c.l.bf16 %v1434_v9  ;;  %v1421_v19 = vunpack.c.h.bf16 %v1434_v9  ;;  %1139 = vst [vmem:[%s2532_s28 + $0x8] sm:$0xff] %v1400_v3  ;;  %1140 = vst [vmem:[%s2532_s28 + $0x18] sm:$0xff] %v1401_v4  ;;  %s2609_s17 = scalar_lea.hbm %s2774_s7, %s1393_s11  ;;  %p1984_p13 = scmp.ne.s32.totalorder %s2611_s15, %s1983_s19 }
 0x2dc   : > { %1568 = vmatpush3.bf16.msra.mxu0 %v923_v57  ;;  %1608 = vmatpush3.bf16.msra.mxu1 %v923_v57  ;;  %1141 = vst [vmem:[%s2532_s28 + $0x28] sm:$0xff] %v1404_v5  ;;  %1142 = vst [vmem:[%s2532_s28 + $0x38] sm:$0xff] %v1405_v6  ;;  %v1424_v20 = vunpack.c.l.bf16 %v1435_v14  ;;  %v1425_v21 = vunpack.c.h.bf16 %v1435_v14  ;;  %v1428_v22 = vunpack.c.l.bf16 %v1436_v15  ;;  %v1429_v23 = vunpack.c.h.bf16 %v1436_v15  ;;  %p2776_p10 = scmp.ne.s32.totalorder %s2775_s18, 0  ;;  %s1989_s13 = scalar_lea.vmem %s1988_s14, 8192 }
 0x2dd   : > { %1143 = vst [vmem:[%s2532_s28 + $0x48] sm:$0xff] %v1408_v10  ;;  %1144 = vst [vmem:[%s2532_s28 + $0x58] sm:$0xff] %v1409_v11  ;;  %p1990_p7 = scmp.lt.s32.totalorder %s2611_s15, %s1988_s14  ;;  %p1991_p11 = scmp.lt.s32.totalorder %s1989_s13, %s1983_s19 }
 0x2de   : > { %1145 = vst [vmem:[%s2532_s28 + $0x68] sm:$0xff] %v1412_v12  ;;  %1146 = vst [vmem:[%s2532_s28 + $0x78] sm:$0xff] %v1413_v13  ;;  %p1985_p5 = pnand %p1984_p13, %p2776_p10 }
 0x2df   : > { %1570 = vmatmul.mubr.msk.bf16.vlgmr.msra.gmra.mrb[0].mxu0 %vm964_vm0, %v1833_v58  ;;  %1578 = vmatmul.mubr.msk.bf16.vlgmr.msra.gmra.mrb[0].mxu1 %vm964_vm0, %v1834_v59  ;;  %1147 = vst [vmem:[%s2532_s28 + $0x88] sm:$0xff] %v1416_v16  ;;  %1148 = vst [vmem:[%s2532_s28 + $0x98] sm:$0xff] %v1417_v17  ;;  %p1992_p4 = por %p1991_p11, %p1990_p7 }
 0x2e0   : > { %1573 = vmatprep.mubr.msk.bf16.mxu0 %vm964_vm0, %v1835_v60  ;;  %1581 = vmatprep.mubr.msk.bf16.mxu1 %vm964_vm0, %v1836_v61  ;;  %1149 = vst [vmem:[%s2532_s28 + $0xa8] sm:$0xff] %v1420_v18  ;;  %1150 = vst [vmem:[%s2532_s28 + $0xb8] sm:$0xff] %v1421_v19  ;;  %p1986_p2 = pneg %p1985_p5 }
 0x2e1   : > { %1151 = vst [vmem:[%s2532_s28 + $0xc8] sm:$0xff] %v1424_v20  ;;  %1152 = vst [vmem:[%s2532_s28 + $0xd8] sm:$0xff] %v1425_v21 }
 0x2e2   : > { %1153 = vst [vmem:[%s2532_s28 + $0xe8] sm:$0xff] %v1428_v22  ;;  %1154 = vst [vmem:[%s2532_s28 + $0xf8] sm:$0xff] %v1429_v23  ;;  %p1993_p6 = pnand %p1992_p4, %p1986_p2 }
 0x2e7   : > { %1574 = vmatmul.mubr.msk.bf16.gmra.mrb[4].mxu0 %vm964_vm0, %v1837_v62  ;;  %1582 = vmatmul.mubr.msk.bf16.gmra.mrb[4].mxu1 %vm964_vm0, %v1838_v63 }
 0x3b2   : > { %v1571_v24 = vpop.f32.mrb[0].mxu0  ;;  %v1579_v25 = vpop.f32.mrb[0].mxu1 }
 0x3b3   : > { %1088 = vst [vmem:[%s2532_s28 + $0x20] sm:$0xff] %v1571_v24  ;;  %1096 = vst [vmem:[%s2532_s28 + $0xa0] sm:$0xff] %v1579_v25  ;;  %v1023_v26 = vpop.f32.mrb[1].mxu0  ;;  %v1055_v27 = vpop.f32.mrb[1].mxu1 }
 0x3b4   : > { %1086 = vst [vmem:[%s2532_s28] sm:$0xff] %v1023_v26  ;;  %1094 = vst [vmem:[%s2532_s28 + $0x80] sm:$0xff] %v1055_v27  ;;  %v1572_v28 = vpop.f32.mrb[2].mxu0  ;;  %v1580_v29 = vpop.f32.mrb[2].mxu1 }
 0x3b5   : > { %1089 = vst [vmem:[%s2532_s28 + $0x30] sm:$0xff] %v1572_v28  ;;  %1097 = vst [vmem:[%s2532_s28 + $0xb0] sm:$0xff] %v1580_v29  ;;  %v1026_v30 = vpop.f32.mrb[3].mxu0  ;;  %v1058_v31 = vpop.f32.mrb[3].mxu1 }
 0x3b6   : > { %1087 = vst [vmem:[%s2532_s28 + $0x10] sm:$0xff] %v1026_v30  ;;  %1095 = vst [vmem:[%s2532_s28 + $0x90] sm:$0xff] %v1058_v31 }
 0x3ba   : > { %v1575_v32 = vpop.f32.mrb[4].mxu0  ;;  %v1583_v33 = vpop.f32.mrb[4].mxu1 }
 0x3bb   : > { %1092 = vst [vmem:[%s2532_s28 + $0x60] sm:$0xff] %v1575_v32  ;;  %1100 = vst [vmem:[%s2532_s28 + $0xe0] sm:$0xff] %v1583_v33  ;;  %v1039_v34 = vpop.f32.mrb[5].mxu0  ;;  %v1071_v35 = vpop.f32.mrb[5].mxu1 }
 0x3bc   : > { %1090 = vst [vmem:[%s2532_s28 + $0x40] sm:$0xff] %v1039_v34  ;;  %1098 = vst [vmem:[%s2532_s28 + $0xc0] sm:$0xff] %v1071_v35  ;;  %v1576_v36 = vpop.f32.mrb[6].mxu0  ;;  %v1584_v37 = vpop.f32.mrb[6].mxu1 }
 0x3bd   : > { %1093 = vst [vmem:[%s2532_s28 + $0x70] sm:$0xff] %v1576_v36  ;;  %1101 = vst [vmem:[%s2532_s28 + $0xf0] sm:$0xff] %v1584_v37  ;;  %v1042_v38 = vpop.f32.mrb[7].mxu0  ;;  %v1074_v39 = vpop.f32.mrb[7].mxu1 }
 0x3be   : > { %1091 = vst [vmem:[%s2532_s28 + $0x50] sm:$0xff] %v1042_v38  ;;  %1099 = vst [vmem:[%s2532_s28 + $0xd0] sm:$0xff] %v1074_v39 }
 0x3bf   : > { %1996 = shalt.err (!%p1993_p6)
}
 0x3c0   : > { %s1997_s0 = scalar_lea.hbm %s2609_s17, 4096  ;;  %s2001_s11 = scalar_lea.hbm %s2774_s7, 24576 }
 0x3c1   : > { %p1998_p8 = scmp.ne.s32.totalorder %s2609_s17, %s1997_s0  ;;  %p2002_p3 = scmp.lt.u32.totalorder %s2609_s17, %s2774_s7 }
 0x3c2   : > { %p2003_p9 = scmp.lt.u32.totalorder %s2001_s11, %s1997_s0  ;;  %p2005_p13 = scmp.lt.u32.totalorder %s1997_s0, %s2609_s17 }
 0x3c3   : > { %p1999_p0 = pnand %p1998_p8, %p2776_p10 }
 0x3c4   : > { %p2004_p1 = por %p2003_p9, %p2002_p3 }
 0x3c5   : > { %p2000_p12 = pneg %p1999_p0 }
 0x3c6   : > { %p2006_p5 = por %p2005_p13, %p2004_p1 }
 0x3c8   : > { %p2007_p2 = pnand %p2006_p5, %p2000_p12 }
 0x3ca   : > { %2010 = shalt.err (!%p2007_p2)
}
 0x3cb   : > { %s2159_s27 = smov 256   ;;  %s2160_s19 = smov 16  }
 0x3cc   : > { %1629 = dma.vmem_to_hbm [thread:$0]  (%p2776_p10), %s2611_s15, 4096, %s2609_s17, %s2621_s9, %s2159_s27, %s2159_s27, %s2160_s19  }
 0x3cd PF: > { %s2777_s10 = sld [smem:[#allocation19_spill]]  ;;  %s2778_s14 = sld [smem:[#allocation26_spill]] }
 0x3ce   : > { %p1659_p7 = scmp.ge.s32.totalorder %s2145_s6, 2 }
 0x3d3   : > { %s1187_s13 = sand.u32 1, %s2777_s10   ;;  %p2779_p11 = scmp.ne.s32.totalorder %s2778_s14, 0 }
 0x3d4   : > { %s1188_s0 = scalar_lea.sflag [#allocation5], %s1187_s13 }
 0x3d5   : > { %p1649_p4 = pnand %p1659_p7, %p2779_p11 }
 0x3d7   : > { %2088 = dma.done.wait (!%p1649_p4), %s1188_s0, 4096  }
 0x3d8   : > { %2090 = vsyncadd (!%p1649_p4), %s1188_s0, 4294963200  ;;  %s23_s6 = sadd.s32 1, %s2145_s6   ;;  %s2781_s18 = sld [smem:[#allocation20_spill]] }
 0x3d9   : > { %p2650_p6 = scmp.ge.s32.totalorder %s23_s6, 8   ;;  %s2782_s15 = smov %s2797_s24 }
 0x3da   : > { %s2784_s19 = smov %s2101_s20  ;;  %s2785_s20 = smov %s2459_s1 }
 0x3db   : > { %s2786_s21 = smov %s2109_s22  ;;  %s2787_s22 = smov %s2113_s23 }
 0x3dc   : > { %s2788_s23 = smov %s2444_s8  ;;  %s2789_s24 = smov %s2121_s25 }
 0x3dd   : > { %s2790_s25 = smov %s2125_s26  ;;  %s2791_s26 = smov %s2456_s3 }
 0x3de   : > { %s2792_s27 = smov %s2137_s29  ;;  %s2793_s28 = smov %s2141_s30 }
 0x3df   : > { %s2794_s29 = smov %s2782_s15  ;;  %s2795_s30 = smov %s2801_s16 }
 0x3e0   :  { %22 = sbr.rel (!%p2650_p6) target bundleno = 17 (0x11), region = 113 }
 0x3e7   :  { %1193 = vsyncpa [#allocation4], 1 }
 0x3e8   :  { %1195 = vsyncpa [#allocation4 + $0x1], 1 }
 0x3e9   :  { %1196 = vsyncpa [#allocation7], 1 }
 0x3ea   :  { %1197 = vsyncpa [#allocation11], 1 }
 0x3eb   :  { %1198 = vsyncpa [#allocation5], 1 }
 0x3ec   :  { %1200 = vsyncpa [#allocation5 + $0x1], 1 }

</bundles_post_ra>
